<compile_context>
chip_gen: v7x
topology: tpu7x:2x2x1
jax: 0.10.0
libtpu: 0.0.40
codegen_flags: <defaults>
</compile_context>

<pallas_src>
import functools

import jax
import jax.numpy as jnp
from jax.experimental import pallas as pl
from jax.experimental.pallas import tpu as pltpu

PACK = 128  # lane-dense packed output width (one full vreg lane row)


def _round_up(x, m):
    return (x + m - 1) // m * m


def _icm_fused_kernel(s_ref, ns_ref, a_ref, w_ref, b_ref, o_ref):
    """Fused ICM forward for both heads, pure VPU.

    Packed layout (all f32):
      w_ref : (8, PACK)  rows 0..2 = state, rows 3..5 = next_state, row 6 = action,
                         row 7 = zero pad.
                         lane 0          -> collapsed action_net weights
                         lanes 1..1+OUT  -> collapsed state_net weights
      b_ref : (1, PACK)  lane 0 = action bias, lanes 1..1+OUT = state-net bias
      o_ref : (TB, PACK) lane 0 = pred_action, lanes 1..1+OUT = pred_next_state_feature
    """
    s = s_ref[...]    # (TB, 3)
    ns = ns_ref[...]  # (TB, 3)
    a = a_ref[...]    # (TB, 1)
    w = w_ref[...]    # (8, PACK)

    # Bias broadcast hoisted once; K is tiny & static -> unrolled VPU FMAs.
    acc = jnp.broadcast_to(b_ref[...], o_ref.shape).astype(jnp.float32)
    for k in range(3):                                 # state -> both heads
        acc = acc + s[:, k:k + 1] * w[k:k + 1, :]
    for k in range(3):                                 # next_state -> action head
        acc = acc + ns[:, k:k + 1] * w[3 + k:4 + k, :]
    acc = acc + a[:, 0:1] * w[6:7, :]                  # action -> state head
    o_ref[...] = acc


def _icm_pallas(state, next_state, action, w_pack, b_pack):
    """Runs the fused kernel on (B, *) f32 inputs; returns packed (B, PACK) output."""
    B = state.shape[0]
    TB = min(512, _round_up(B, 8))       # batch tile: multiple of 8, capped for VMEM
    Bp = _round_up(B, TB)
    if Bp != B:
        pad = ((0, Bp - B), (0, 0))
        state = jnp.pad(state, pad)
        next_state = jnp.pad(next_state, pad)
        action = jnp.pad(action, pad)

    flops = 2 * Bp * 7 * PACK
    bytes_accessed = 4 * (Bp * (3 + 3 + 1 + PACK) + w_pack.size + b_pack.size)

    out = pl.pallas_call(
        _icm_fused_kernel,
        out_shape=jax.ShapeDtypeStruct((Bp, PACK), jnp.float32),
        grid=(Bp // TB,),
        in_specs=[
            pl.BlockSpec((TB, 3), lambda i: (i, 0)),        # state (streamed)
            pl.BlockSpec((TB, 3), lambda i: (i, 0)),        # next_state (streamed)
            pl.BlockSpec((TB, 1), lambda i: (i, 0)),        # action (streamed)
            pl.BlockSpec((8, PACK), lambda i: (0, 0)),      # packed weights (resident)
            pl.BlockSpec((1, PACK), lambda i: (0, 0)),      # packed bias (resident)
        ],
        out_specs=pl.BlockSpec((TB, PACK), lambda i: (i, 0)),
        compiler_params=pltpu.CompilerParams(
            dimension_semantics=("parallel",)),
        cost_estimate=pl.CostEstimate(
            flops=flops, transcendentals=0, bytes_accessed=bytes_accessed),
    )(state, next_state, action, w_pack, b_pack)
    return out[:B]


def _linear_params(key, fan_in, fan_out):
    """torch.nn.Linear default init: U(-1/sqrt(fan_in), 1/sqrt(fan_in)).
    Weight stored (fan_in, fan_out) for x @ W."""
    kw, kb = jax.random.split(key)
    bound = 1.0 / jnp.sqrt(jnp.float32(fan_in))
    w = jax.random.uniform(kw, (fan_in, fan_out), jnp.float32, -bound, bound)
    b = jax.random.uniform(kb, (1, fan_out), jnp.float32, -bound, bound)
    return w, b


def init_icm_params(key, output_size):
    k1, k2, k3, k4 = jax.random.split(key, 4)
    aw1, ab1 = _linear_params(k1, 6, 3)          # action_net: Linear(6, 3)
    aw2, ab2 = _linear_params(k2, 3, 1)          #             Linear(3, 1)
    sw1, sb1 = _linear_params(k3, 4, 512)        # state_net:  Linear(4, 512)
    sw2, sb2 = _linear_params(k4, 512, output_size)  #         Linear(512, out)
    return dict(aw1=aw1, ab1=ab1, aw2=aw2, ab2=ab2,
                sw1=sw1, sb1=sb1, sw2=sw2, sb2=sb2)


def pack_icm_params(params, output_size):
    """Collapse each activation-free Linear pair and pack into one lane-dense
    (8, PACK) weight slab + (1, PACK) bias (done once, outside the hot path)."""
    assert 1 + output_size <= PACK
    wa = params["aw1"] @ params["aw2"]                     # (6, 1)
    ba = params["ab1"] @ params["aw2"] + params["ab2"]     # (1, 1)
    ws = params["sw1"] @ params["sw2"]                     # (4, OUT)
    bs = params["sb1"] @ params["sw2"] + params["sb2"]     # (1, OUT)

    w = jnp.zeros((8, PACK), jnp.float32)
    w = w.at[0:6, 0].set(wa[:, 0])                         # [state; next_state] -> action
    w = w.at[0:3, 1:1 + output_size].set(ws[0:3, :])       # state  -> next-state feature
    w = w.at[6, 1:1 + output_size].set(ws[3, :])           # action -> next-state feature
    b = jnp.zeros((1, PACK), jnp.float32)
    b = b.at[0, 0].set(ba[0, 0])
    b = b.at[0, 1:1 + output_size].set(bs[0, :])
    return {"w": w, "b": b}


@functools.partial(jax.jit, static_argnames=("output_size",))
def icm_forward(packed, state, next_state, action, *, output_size):
    """ICMModel.forward (implementable subset).

    state, next_state: (B, 3); action: (B, 1).
    Returns (real_next_state_feature, pred_next_state_feature, pred_action).
    """
    state = state.astype(jnp.float32)
    next_state = next_state.astype(jnp.float32)
    action = action.astype(jnp.float32)

    out = _icm_pallas(state, next_state, action, packed["w"], packed["b"])
    pred_action = out[:, 0:1]                              # (B, 1)
    pred_next_state_feature = out[:, 1:1 + output_size]    # (B, output_size)
    real_next_state_feature = next_state                   # (B, 3)
    return real_next_state_feature, pred_next_state_feature, pred_action


if __name__ == "__main__":
    key = jax.random.PRNGKey(0)
    kp, ks, kn, ka = jax.random.split(key, 4)

    B = 8            # small batch
    OUTPUT_SIZE = 3  # forward model predicts a 3-dim (Pendulum) state feature

    params = init_icm_params(kp, OUTPUT_SIZE)
    packed = pack_icm_params(params, OUTPUT_SIZE)

    state = jax.random.normal(ks, (B, 3), jnp.float32)
    next_state = jax.random.normal(kn, (B, 3), jnp.float32)
    action = jax.random.normal(ka, (B, 1), jnp.float32)

    real_f, pred_f, pred_a = icm_forward(packed, state, next_state, action,
                                         output_size=OUTPUT_SIZE)
    jax.block_until_ready((real_f, pred_f, pred_a))

    # Pure-JAX reference against the original (unfused) per-layer params.
    co = jnp.concatenate([state, next_state], axis=1)
    ref_a = (co @ params["aw1"] + params["ab1"]) @ params["aw2"] + params["ab2"]
    sa = jnp.concatenate([state, action], axis=1)
    ref_f = (sa @ params["sw1"] + params["sb1"]) @ params["sw2"] + params["sb2"]
    # Layer-collapse changes rounding order slightly; well within these tolerances.
    assert jnp.allclose(pred_a, ref_a, atol=1e-4, rtol=1e-4)
    assert jnp.allclose(pred_f, ref_f, atol=1e-4, rtol=1e-4)
    assert jnp.allclose(real_f, next_state)
    assert pred_a.shape == (B, 1)
    assert pred_f.shape == (B, OUTPUT_SIZE)
    assert real_f.shape == (B, 3)

    print("KERNEL_OK")
</pallas_src>

<mosaic_0001>
module attributes {stable_mosaic.version = 11 : i64} {
  func.func @_icm_fused_kernel(%arg0: i32, %arg1: memref<8x3xf32, #tpu.memory_space<vmem>>, %arg2: memref<8x3xf32, #tpu.memory_space<vmem>>, %arg3: memref<8x1xf32, #tpu.memory_space<vmem>>, %arg4: memref<8x128xf32, #tpu.memory_space<vmem>>, %arg5: memref<1x128xf32, #tpu.memory_space<vmem>>, %arg6: memref<8x128xf32, #tpu.memory_space<vmem>>) attributes {dimension_semantics = [#tpu.dimension_semantics<parallel>], iteration_bounds = array<i64: 1>, scalar_prefetch = 0 : i64, scratch_operands = 0 : i64, tpu.core_type = #tpu.core_type<tc>, window_params = [{transform_indices = @transform_0, window_bounds = array<i64: 8, 3>}, {transform_indices = @transform_1, window_bounds = array<i64: 8, 3>}, {transform_indices = @transform_2, window_bounds = array<i64: 8, 1>}, {pipeline_mode = #tpu.pipeline_mode<synchronous>, transform_indices = @transform_3, window_bounds = array<i64: 8, 128>}, {pipeline_mode = #tpu.pipeline_mode<synchronous>, transform_indices = @transform_4, window_bounds = array<i64: 1, 128>}, {transform_indices = @transform_5, window_bounds = array<i64: 8, 128>}]} {
    %c0 = arith.constant 0 : index
    %c0_0 = arith.constant 0 : index
    %0 = vector.load %arg1[%c0, %c0_0] : memref<8x3xf32, #tpu.memory_space<vmem>>, vector<8x3xf32>
    %c0_1 = arith.constant 0 : index
    %c0_2 = arith.constant 0 : index
    %1 = vector.load %arg2[%c0_1, %c0_2] : memref<8x3xf32, #tpu.memory_space<vmem>>, vector<8x3xf32>
    %c0_3 = arith.constant 0 : index
    %c0_4 = arith.constant 0 : index
    %2 = vector.load %arg3[%c0_3, %c0_4] : memref<8x1xf32, #tpu.memory_space<vmem>>, vector<8x1xf32>
    %c0_5 = arith.constant 0 : index
    %c0_6 = arith.constant 0 : index
    %3 = vector.load %arg4[%c0_5, %c0_6] : memref<8x128xf32, #tpu.memory_space<vmem>>, vector<8x128xf32>
    %c0_7 = arith.constant 0 : index
    %c0_8 = arith.constant 0 : index
    %4 = vector.load %arg5[%c0_7, %c0_8] : memref<1x128xf32, #tpu.memory_space<vmem>>, vector<1x128xf32>
    %5 = vector.shape_cast %4 : vector<1x128xf32> to vector<1x128xf32>
    %6 = vector.broadcast %5 : vector<1x128xf32> to vector<8x128xf32>
    %7 = vector.extract_strided_slice %0 {offsets = [0, 0], sizes = [8, 1], strides = [1, 1]} : vector<8x3xf32> to vector<8x1xf32>
    %8 = vector.extract_strided_slice %3 {offsets = [0, 0], sizes = [1, 128], strides = [1, 1]} : vector<8x128xf32> to vector<1x128xf32>
    %9 = vector.broadcast %7 : vector<8x1xf32> to vector<8x128xf32>
    %10 = vector.broadcast %8 : vector<1x128xf32> to vector<8x128xf32>
    %11 = arith.mulf %9, %10 : vector<8x128xf32>
    %12 = arith.addf %6, %11 : vector<8x128xf32>
    %13 = vector.extract_strided_slice %0 {offsets = [0, 1], sizes = [8, 1], strides = [1, 1]} : vector<8x3xf32> to vector<8x1xf32>
    %14 = vector.extract_strided_slice %3 {offsets = [1, 0], sizes = [1, 128], strides = [1, 1]} : vector<8x128xf32> to vector<1x128xf32>
    %15 = vector.broadcast %13 : vector<8x1xf32> to vector<8x128xf32>
    %16 = vector.broadcast %14 : vector<1x128xf32> to vector<8x128xf32>
    %17 = arith.mulf %15, %16 : vector<8x128xf32>
    %18 = arith.addf %12, %17 : vector<8x128xf32>
    %19 = vector.extract_strided_slice %0 {offsets = [0, 2], sizes = [8, 1], strides = [1, 1]} : vector<8x3xf32> to vector<8x1xf32>
    %20 = vector.extract_strided_slice %3 {offsets = [2, 0], sizes = [1, 128], strides = [1, 1]} : vector<8x128xf32> to vector<1x128xf32>
    %21 = vector.broadcast %19 : vector<8x1xf32> to vector<8x128xf32>
    %22 = vector.broadcast %20 : vector<1x128xf32> to vector<8x128xf32>
    %23 = arith.mulf %21, %22 : vector<8x128xf32>
    %24 = arith.addf %18, %23 : vector<8x128xf32>
    %25 = vector.extract_strided_slice %1 {offsets = [0, 0], sizes = [8, 1], strides = [1, 1]} : vector<8x3xf32> to vector<8x1xf32>
    %26 = vector.extract_strided_slice %3 {offsets = [3, 0], sizes = [1, 128], strides = [1, 1]} : vector<8x128xf32> to vector<1x128xf32>
    %27 = vector.broadcast %25 : vector<8x1xf32> to vector<8x128xf32>
    %28 = vector.broadcast %26 : vector<1x128xf32> to vector<8x128xf32>
    %29 = arith.mulf %27, %28 : vector<8x128xf32>
    %30 = arith.addf %24, %29 : vector<8x128xf32>
    %31 = vector.extract_strided_slice %1 {offsets = [0, 1], sizes = [8, 1], strides = [1, 1]} : vector<8x3xf32> to vector<8x1xf32>
    %32 = vector.extract_strided_slice %3 {offsets = [4, 0], sizes = [1, 128], strides = [1, 1]} : vector<8x128xf32> to vector<1x128xf32>
    %33 = vector.broadcast %31 : vector<8x1xf32> to vector<8x128xf32>
    %34 = vector.broadcast %32 : vector<1x128xf32> to vector<8x128xf32>
    %35 = arith.mulf %33, %34 : vector<8x128xf32>
    %36 = arith.addf %30, %35 : vector<8x128xf32>
    %37 = vector.extract_strided_slice %1 {offsets = [0, 2], sizes = [8, 1], strides = [1, 1]} : vector<8x3xf32> to vector<8x1xf32>
    %38 = vector.extract_strided_slice %3 {offsets = [5, 0], sizes = [1, 128], strides = [1, 1]} : vector<8x128xf32> to vector<1x128xf32>
    %39 = vector.broadcast %37 : vector<8x1xf32> to vector<8x128xf32>
    %40 = vector.broadcast %38 : vector<1x128xf32> to vector<8x128xf32>
    %41 = arith.mulf %39, %40 : vector<8x128xf32>
    %42 = arith.addf %36, %41 : vector<8x128xf32>
    %43 = vector.extract_strided_slice %3 {offsets = [6, 0], sizes = [1, 128], strides = [1, 1]} : vector<8x128xf32> to vector<1x128xf32>
    %44 = vector.broadcast %2 : vector<8x1xf32> to vector<8x128xf32>
    %45 = vector.broadcast %43 : vector<1x128xf32> to vector<8x128xf32>
    %46 = arith.mulf %44, %45 : vector<8x128xf32>
    %47 = arith.addf %42, %46 : vector<8x128xf32>
    %c0_9 = arith.constant 0 : index
    %c0_10 = arith.constant 0 : index
    %48 = vector.load %arg6[%c0_9, %c0_10] : memref<8x128xf32, #tpu.memory_space<vmem>>, vector<8x128xf32>
    tpu.vector_store %arg6[%c0_9, %c0_10], %47 {strides = array<i32>} : memref<8x128xf32, #tpu.memory_space<vmem>>, vector<8x128xf32>,
    return
  }
  func.func @transform_0(%arg0: i32) -> (i32, i32) {
    %c0_i32 = arith.constant 0 : i32
    %c0_i32_0 = arith.constant 0 : i32
    return %arg0, %c0_i32 : i32, i32
  }
  func.func @transform_1(%arg0: i32) -> (i32, i32) {
    %c0_i32 = arith.constant 0 : i32
    %c0_i32_0 = arith.constant 0 : i32
    return %arg0, %c0_i32 : i32, i32
  }
  func.func @transform_2(%arg0: i32) -> (i32, i32) {
    %c0_i32 = arith.constant 0 : i32
    %c0_i32_0 = arith.constant 0 : i32
    return %arg0, %c0_i32 : i32, i32
  }
  func.func @transform_3(%arg0: i32) -> (i32, i32) {
    %c0_i32 = arith.constant 0 : i32
    %c0_i32_0 = arith.constant 0 : i32
    %c0_i32_1 = arith.constant 0 : i32
    return %c0_i32, %c0_i32_0 : i32, i32
  }
  func.func @transform_4(%arg0: i32) -> (i32, i32) {
    %c0_i32 = arith.constant 0 : i32
    %c0_i32_0 = arith.constant 0 : i32
    %c0_i32_1 = arith.constant 0 : i32
    return %c0_i32, %c0_i32_0 : i32, i32
  }
  func.func @transform_5(%arg0: i32) -> (i32, i32) {
    %c0_i32 = arith.constant 0 : i32
    %c0_i32_0 = arith.constant 0 : i32
    return %arg0, %c0_i32 : i32, i32
  }
}

</mosaic_0001>

<bundles_post_ra>
// kernel: icm_forward.1
= control target key start
LH: loop header
LB: loop body
LE: loop exit
PB: predicated region body
PF: predicated region fallthrough
CT: control target
= control target key end

     0   :  { %v121_v0 = vmov 2   ;;  %v122_v1 = vmov 0   ;;  %v123_v4 = vmov 1   ;;  %v36_v6 = vlaneseq  ;;  %s172_s0 = inlined_call_operand.vmem [shape: f32[8,3], index: 0, kind: input, shape index: {}]   ;;  %s173_s1 = inlined_call_operand.vmem [shape: f32[8,3], index: 1, kind: input, shape index: {}]   ;;  %s174_s2 = inlined_call_operand.vmem [shape: f32[8,1], index: 2, kind: input, shape index: {}]   ;;  %s175_s3 = inlined_call_operand.vmem [shape: f32[8,128], index: 3, kind: input, shape index: {}]   ;;  %s176_s4 = inlined_call_operand.vmem [shape: f32[1,128], index: 4, kind: input, shape index: {}]   ;;  %s177_s5 = inlined_call_operand.vmem [shape: f32[8,128], index: 5, kind: output, shape index: {}]  }
   0x1   :  { %115 = vset.pattern.permute.xlu1 %v121_v0  ;;  %113 = vset.pattern.permute.xlu0 %v122_v1  ;;  %v20_v2 = vld [vmem:[%s172_s0] sm:$0xff] }
   0x2   :  { %53 = vperm.xlu1 %115, %v20_v2   ;;  %33 = vperm.xlu0 %113, %v20_v2   ;;  %v21_v3 = vld [vmem:[%s173_s1] sm:$0xff]  ;;  %v37_v7 = vshrl.u32 %v36_v6, 7 }
   0x3   :  { %v22_v5 = vld [vmem:[%s174_s2] sm:$0xff] }
   0x4   :  { %v38_v8 = vsub.s32 0, %v37_v7  ;;  %v23_v9 = vld [vmem:[%s175_s3] sm:$0xff]  ;;  %v48_v11 = vsub.s32 1, %v37_v7  ;;  %v58_v12 = vsub.s32 2, %v37_v7  ;;  %v69_v16 = vsub.s32 3, %v37_v7 }
   0x5   :  { %v109_v18 = vld [vmem:[%s176_s4] ss:$0 sm:$0xff]  ;;  %v79_v19 = vsub.s32 4, %v37_v7  ;;  %v89_v21 = vsub.s32 5, %v37_v7  ;;  %v100_v31 = vsub.s32 6, %v37_v7 }
   0x6   :  { %116 = vset.pattern.permute.xlu1 %v122_v1  ;;  %114 = vset.pattern.permute.xlu0 %v123_v4  ;;  %v39_v10 = vrot.slane %v23_v9, %v38_v8  ;;  %v49_v17 = vrot.slane %v23_v9, %v48_v11  ;;  %v59_v20 = vrot.slane %v23_v9, %v58_v12 }
   0x7   :  { %64 = vperm.xlu1 %116, %v21_v3   ;;  %43 = vperm.xlu0 %114, %v20_v2   ;;  %v70_v25 = vrot.slane %v23_v9, %v69_v16  ;;  %v80_v27 = vrot.slane %v23_v9, %v79_v19  ;;  %v90_v30 = vrot.slane %v23_v9, %v89_v21 }
   0x8   :  { %v101_v39 = vrot.slane %v23_v9, %v100_v31 }
   0xb   :  { %117 = vset.pattern.permute.xlu1 %v123_v4  ;;  %118 = vset.pattern.permute.xlu0 %v121_v0 }
   0xc   :  { %74 = vperm.xlu1 %117, %v21_v3   ;;  %84 = vperm.xlu0 %118, %v21_v3  }
  0x10   :  { %119 = vset.pattern.permute.xlu1 %v122_v1  ;;  %120 = vset.pattern.permute.xlu0 %v122_v1 }
  0x11   :  { %95 = vperm.xlu1 %119, %v22_v5  }
  0x81   :  { %v54_v13 = vpop.permute.xlu1 %53  ;;  %v34_v14 = vpop.permute.xlu0 %33 }
  0x82   :  { %v40_v15 = vmul.f32 %v39_v10, %v34_v14  ;;  %v60_v28 = vmul.f32 %v59_v20, %v54_v13 }
  0x84   :  { %v41_v24 = vadd.f32 %v109_v18, %v40_v15 }
  0x86   :  { %v65_v22 = vpop.permute.xlu1 %64  ;;  %v44_v23 = vpop.permute.xlu0 %43 }
  0x87   :  { %v50_v26 = vmul.f32 %v49_v17, %v44_v23  ;;  %v71_v32 = vmul.f32 %v70_v25, %v65_v22 }
  0x89   :  { %v51_v29 = vadd.f32 %v50_v26, %v41_v24 }
  0x8b   :  { %v61_v33 = vadd.f32 %v60_v28, %v51_v29  ;;  %v75_v34 = vpop.permute.xlu1 %74  ;;  %v85_v35 = vpop.permute.xlu0 %84 }
  0x8c   :  { %v81_v36 = vmul.f32 %v80_v27, %v75_v34  ;;  %v91_v38 = vmul.f32 %v90_v30, %v85_v35 }
  0x8d   :  { %v72_v37 = vadd.f32 %v71_v32, %v61_v33 }
  0x8f   :  { %v82_v40 = vadd.f32 %v81_v36, %v72_v37 }
  0x90   :  { %v96_v41 = vpop.permute.xlu1 %95 }
  0x91   :  { %v92_v42 = vadd.f32 %v91_v38, %v82_v40  ;;  %v102_v43 = vmul.f32 %v101_v39, %v96_v41 }
  0x93   :  { %v103_v44 = vadd.f32 %v102_v43, %v92_v42 }
  0x95   :  { %104 = vst [vmem:[%s177_s5] sm:$0xff] %v103_v44 }

</bundles_post_ra>
